<compile_context>
chip_gen: v6e
topology: v6e:2x2x1
jax: 0.10.0
libtpu: 0.0.40
codegen_flags: <defaults>
</compile_context>

<pallas_src>
import math

import jax
import jax.numpy as jnp
from jax import lax
from jax.experimental import pallas as pl
from jax.experimental.pallas import tpu as pltpu

_MIB = 1 << 20

# a[i, k] * b[j, k] -> [i, j]   (== a @ b.T, consumed natively by the MXU).
_CONTRACT_LAST = (((1,), (1,)), ((), ()))
# [b, i, k] x [b, j, k] -> [b, i, j]   (batched bmm contracting the feature axis).
_BATCHED_CONTRACT_LAST = (((2,), (2,)), ((0,), (0,)))


def _round_up(x, k):
    return ((x + k - 1) // k) * k


def _make_kernel(block_b, tn, m, d0, d1, hp, pack, compute_dtype):
    def kernel(t0_ref, t1_ref, w0_ref, w1_ref, o_ref, p1_ref):
        # NOTE(correctness): the p1 cache below is only valid because the
        # n-tile axis is the *innermost* grid axis ("arbitrary"), so every
        # batch tile starts at pl.program_id(1) == 0 and p1_ref always holds
        # the projection of the current batch tile.  Do not reorder the grid.
        @pl.when(pl.program_id(1) == 0)
        def _():
            t1 = t1_ref[...].astype(compute_dtype).reshape(block_b * m, d1)
            w1 = w1_ref[...].astype(compute_dtype)
            p1 = lax.dot_general(t1, w1, _CONTRACT_LAST,
                                 preferred_element_type=jnp.float32)
            p1_ref[...] = p1.astype(p1_ref.dtype).reshape(block_b, m, hp)

        # t0 projection: one row-fused matmul over the whole batch tile.
        t0 = t0_ref[...].astype(compute_dtype).reshape(block_b * tn, d0)
        w0 = w0_ref[...].astype(compute_dtype)
        p0 = lax.dot_general(t0, w0, _CONTRACT_LAST,
                             preferred_element_type=jnp.float32)
        p0 = p0.astype(compute_dtype).reshape(block_b, tn, hp)

        # TODO(synk): optional `activation` hook (None in the reference default).

        # Final bmm: ONE batched dot_general (no unrolled per-batch matmuls).
        res = lax.dot_general(p0, p1_ref[...], _BATCHED_CONTRACT_LAST,
                              preferred_element_type=jnp.float32)

        if pack:
            # Lane-dense [tn, block_b*m] output slab: store each batch slice
            # into its lane band as it is produced (short live ranges).
            for b in range(block_b):
                o_ref[0, :, b * m:(b + 1) * m] = res[b].astype(o_ref.dtype)
        else:
            o_ref[...] = res.astype(o_ref.dtype)

    return kernel


def projected_dot_product(t0, t1, w0, w1, *, compute_dtype=jnp.bfloat16,
                          out_dtype=jnp.float32):
    """t0: [B, n, d0], t1: [B, m, d1], w0: [H, d0], w1: [H, d1] -> [B, n, m]."""
    B, n, d0 = t0.shape
    B1, m, d1 = t1.shape
    H = w0.shape[0]
    assert B1 == B and w0.shape == (H, d0) and w1.shape == (H, d1)

    # ----------------- generation-aware VMEM / tile budget --------------------
    try:
        vmem_cap = int(pltpu.get_tpu_info().vmem_capacity_bytes)
    except Exception:  # conservative fallback if the query is unavailable
        vmem_cap = 64 * _MIB
    big_vmem = vmem_cap >= 100 * _MIB            # v5e / v6e class (128 MiB)
    if big_vmem:
        hard_cap = min(100 * _MIB, vmem_cap - 16 * _MIB)
        tn_cap = 512                             # ~85% of HBM roofline on v6e
        two_core_hint = False
    else:                                        # v7x class (64 MiB, 2 TCs)
        hard_cap = max(min(44 * _MIB, (2 * vmem_cap) // 3), 12 * _MIB)
        tn_cap = 256
        two_core_hint = True
    work_budget = (3 * hard_cap) // 5            # headroom for Mosaic scratch

    in0_b = jnp.dtype(t0.dtype).itemsize
    in1_b = jnp.dtype(t1.dtype).itemsize
    w_b = jnp.dtype(w0.dtype).itemsize
    c_b = jnp.dtype(compute_dtype).itemsize
    out_b = jnp.dtype(out_dtype).itemsize

    hp = _round_up(H, 128)                       # lane-dense hidden (zero-padded)

    # ------------------------------- n tiling ---------------------------------
    # Split n as evenly as possible under the cap (avoids e.g. 260 -> 512 pad),
    # rounded to sublane groups of 16.
    n_tiles = pl.cdiv(n, tn_cap)
    tn = _round_up(pl.cdiv(n, n_tiles), 16)
    nn = pl.cdiv(n, tn)
    n_pad = nn * tn

    pack = m < 128                               # pack batch into output lanes

    def vmem_est(bb):
        t0_t = bb * tn * d0 * in0_b
        t1_t = bb * m * d1 * in1_b
        w_t = hp * (d0 + d1) * w_b
        out_t = bb * tn * m * out_b
        p1_t = bb * m * hp * c_b                 # persistent scratch
        p0_t = bb * tn * hp * (4 + c_b)          # f32 acc + cast copy
        res_t = bb * tn * m * 4
        return 2 * (t0_t + t1_t + out_t + w_t) + p1_t + p0_t + res_t

    # ------------------------------ batch tiling ------------------------------
    row_target = 256                             # rows to fill an MXU pass
    want = max(1, pl.cdiv(row_target, tn))
    if pack:
        want = max(want, pl.cdiv(128, m))        # >=128 packed output lanes
    block_b = min(want, B)
    b_tiles = pl.cdiv(B, block_b)                # near-divisor of B (no ~2x pad)
    block_b = pl.cdiv(B, b_tiles)
    if pack:
        b_group = 128 // math.gcd(m, 128)        # smallest k with k*m % 128 == 0
        if B >= b_group:
            block_b = _round_up(block_b, b_group)
    while block_b > 1 and vmem_est(block_b) > work_budget:
        block_b -= 1
    if two_core_hint and B >= 2 and pl.cdiv(B, block_b) < 2:
        block_b = pl.cdiv(B, 2)                  # keep the 2nd TensorCore busy
    nb = pl.cdiv(B, block_b)
    B_pad = nb * block_b
    # TODO(synk): if even block_b == 1 overflows the budget (huge n*m), an
    # additional m-tile grid axis would be needed; not required for the shapes
    # this module is used with.

    # ---------------- wrapper-side zero padding (only when needed) ------------
    # Inputs stay in their native dtype; the cast to compute_dtype happens
    # inside the kernel (saves a full HBM read+write pass for a wrapper cast).
    t0p = t0 if (B_pad == B and n_pad == n) else jnp.pad(
        t0, ((0, B_pad - B), (0, n_pad - n), (0, 0)))
    t1p = t1 if B_pad == B else jnp.pad(t1, ((0, B_pad - B), (0, 0), (0, 0)))
    w0p = w0 if hp == H else jnp.pad(w0, ((0, hp - H), (0, 0)))
    w1p = w1 if hp == H else jnp.pad(w1, ((0, hp - H), (0, 0)))

    if pack:
        out_shape = jax.ShapeDtypeStruct((nb, n_pad, block_b * m), out_dtype)
        out_spec = pl.BlockSpec((1, tn, block_b * m), lambda b, i: (b, i, 0))
    else:
        out_shape = jax.ShapeDtypeStruct((B_pad, n_pad, m), out_dtype)
        out_spec = pl.BlockSpec((block_b, tn, m), lambda b, i: (b, i, 0))

    flops = 2 * B_pad * hp * (n_pad * d0 + m * d1 + n_pad * m)
    bytes_accessed = int(t0p.size * in0_b + t1p.size * in1_b
                         + (w0p.size + w1p.size) * w_b
                         + B_pad * n_pad * m * out_b)

    kernel = _make_kernel(block_b, tn, m, d0, d1, hp, pack, compute_dtype)

    vmem_limit = int(min(hard_cap,
                         max(vmem_est(block_b) * 3 // 2 + 2 * _MIB, 16 * _MIB)))

    # TODO(synk): w0/w1/t1 are grid-invariant along the n axis; a Buffered(1)
    # pipeline_mode would free one buffer each of VMEM (skipped for portability).
    out = pl.pallas_call(
        kernel,
        out_shape=out_shape,
        grid_spec=pltpu.PrefetchScalarGridSpec(
            num_scalar_prefetch=0,
            grid=(nb, nn),                       # n-tiles innermost (p1 cache!)
            in_specs=[
                pl.BlockSpec((block_b, tn, d0), lambda b, i: (b, i, 0)),
                pl.BlockSpec((block_b, m, d1), lambda b, i: (b, 0, 0)),
                pl.BlockSpec((hp, d0), lambda b, i: (0, 0)),
                pl.BlockSpec((hp, d1), lambda b, i: (0, 0)),
            ],
            out_specs=out_spec,
            scratch_shapes=[pltpu.VMEM((block_b, m, hp), compute_dtype)],
        ),
        compiler_params=pltpu.CompilerParams(
            dimension_semantics=("parallel", "arbitrary"),
            vmem_limit_bytes=vmem_limit,
        ),
        cost_estimate=pl.CostEstimate(
            flops=int(flops), transcendentals=0, bytes_accessed=bytes_accessed),
    )(t0p, t1p, w0p, w1p)

    if pack:
        out = out.reshape(nb, n_pad, block_b, m)
        out = jnp.transpose(out, (0, 2, 1, 3)).reshape(B_pad, n_pad, m)
    return out[:B, :n]


def _linear_init(key, out_features, in_features):
    """Deterministic nn.Linear-style (Kaiming-uniform) weight init."""
    bound = 1.0 / math.sqrt(in_features)
    return jax.random.uniform(
        key, (out_features, in_features), jnp.float32, minval=-bound, maxval=bound
    )


def _reference(t0, t1, w0, w1):
    p0 = jnp.einsum("bnd,hd->bnh", t0, w0)
    p1 = jnp.einsum("bmd,hd->bmh", t1, w1)
    return jnp.einsum("bnh,bmh->bnm", p0, p1)


if __name__ == "__main__":
    key = jax.random.PRNGKey(0)

    # --- case 1: small shapes, packed (m < 128) output path -------------------
    B, n, m, d0, d1, H = 2, 8, 8, 16, 16, 32
    k0, k1, k2, k3, key = jax.random.split(key, 5)
    t0 = jax.random.normal(k0, (B, n, d0), jnp.float32)
    t1 = jax.random.normal(k1, (B, m, d1), jnp.float32)
    w0 = _linear_init(k2, H, d0)   # projecting_layer.weight  [H, t0_len]
    w1 = _linear_init(k3, H, d1)   # projecting_layer2.weight [H, t1_len]
    ref = _reference(t0, t1, w0, w1)

    # f32 compute path: exact module semantics.
    out_f32 = projected_dot_product(t0, t1, w0, w1, compute_dtype=jnp.float32)
    jax.block_until_ready(out_f32)
    assert out_f32.shape == (B, n, m)
    assert jnp.allclose(out_f32, ref, atol=1e-3, rtol=1e-3)

    # Default fast path: bf16 operands on the MXU, f32 accumulation.
    out_bf16 = projected_dot_product(t0, t1, w0, w1)
    jax.block_until_ready(out_bf16)
    assert out_bf16.shape == (B, n, m)
    assert jnp.allclose(out_bf16, ref, atol=2e-1, rtol=5e-2)

    # --- case 2: m >= 128 (unpacked path) + batch / n / H padding --------------
    B, n, m, d0, d1, H = 3, 40, 128, 24, 40, 96
    k0, k1, k2, k3, key = jax.random.split(key, 5)
    t0 = jax.random.normal(k0, (B, n, d0), jnp.float32)
    t1 = jax.random.normal(k1, (B, m, d1), jnp.float32)
    w0 = _linear_init(k2, H, d0)
    w1 = _linear_init(k3, H, d1)
    ref = _reference(t0, t1, w0, w1)

    out2 = projected_dot_product(t0, t1, w0, w1, compute_dtype=jnp.float32)
    jax.block_until_ready(out2)
    assert out2.shape == (B, n, m)
    assert jnp.allclose(out2, ref, atol=1e-3, rtol=1e-3)

    print("KERNEL_OK")
</pallas_src>

<mosaic_0001>
module attributes {stable_mosaic.version = 11 : i64} {
  func.func @kernel(%arg0: i32, %arg1: i32, %arg2: memref<1x16x16xf32, #tpu.memory_space<vmem>>, %arg3: memref<1x8x16xf32, #tpu.memory_space<vmem>>, %arg4: memref<128x16xf32, #tpu.memory_space<vmem>>, %arg5: memref<128x16xf32, #tpu.memory_space<vmem>>, %arg6: memref<1x16x8xf32, #tpu.memory_space<vmem>>, %arg7: memref<1x8x128xf32, #tpu.memory_space<vmem>>) attributes {dimension_semantics = [#tpu.dimension_semantics<parallel>, #tpu.dimension_semantics<arbitrary>], iteration_bounds = array<i64: 2, 1>, scalar_prefetch = 0 : i64, scratch_operands = 1 : i64, tpu.core_type = #tpu.core_type<tc>, window_params = [{transform_indices = @transform_0, window_bounds = array<i64: 1, 16, 16>}, {transform_indices = @transform_1, window_bounds = array<i64: 1, 8, 16>}, {pipeline_mode = #tpu.pipeline_mode<synchronous>, transform_indices = @transform_2, window_bounds = array<i64: 128, 16>}, {pipeline_mode = #tpu.pipeline_mode<synchronous>, transform_indices = @transform_3, window_bounds = array<i64: 128, 16>}, {transform_indices = @transform_4, window_bounds = array<i64: 1, 16, 8>}]} {
    %c0_i32 = arith.constant 0 : i32
    %0 = arith.cmpi eq, %arg1, %c0_i32 : i32
    %1 = arith.extui %0 : i1 to i32
    %c0_i32_0 = arith.constant 0 : i32
    %2 = arith.cmpi ne, %1, %c0_i32_0 : i32
    scf.if %2 {
      %c0_12 = arith.constant 0 : index
      %c0_13 = arith.constant 0 : index
      %c0_14 = arith.constant 0 : index
      %14 = vector.load %arg3[%c0_12, %c0_13, %c0_14] : memref<1x8x16xf32, #tpu.memory_space<vmem>>, vector<1x8x16xf32>
      %15 = vector.shape_cast %14 : vector<1x8x16xf32> to vector<8x16xf32>
      %c0_15 = arith.constant 0 : index
      %c0_16 = arith.constant 0 : index
      %16 = vector.load %arg5[%c0_15, %c0_16] : memref<128x16xf32, #tpu.memory_space<vmem>>, vector<128x16xf32>
      %cst_17 = arith.constant dense<0.000000e+00> : vector<8x128xf32>
      %17 = tpu.matmul %15, %16, %cst_17 {dimension_numbers = #tpu.dot_dimension_numbers<[1], [1], [0], [0], [0, 0, 1, 0], [], []>} : vector<8x16xf32>, vector<128x16xf32>, vector<8x128xf32> -> vector<8x128xf32>
      %18 = vector.shape_cast %17 : vector<8x128xf32> to vector<1x8x128xf32>
      %c0_18 = arith.constant 0 : index
      %c0_19 = arith.constant 0 : index
      %c0_20 = arith.constant 0 : index
      %19 = vector.load %arg7[%c0_18, %c0_19, %c0_20] : memref<1x8x128xf32, #tpu.memory_space<vmem>>, vector<1x8x128xf32>
      tpu.vector_store %arg7[%c0_18, %c0_19, %c0_20], %18 {strides = array<i32>} : memref<1x8x128xf32, #tpu.memory_space<vmem>>, vector<1x8x128xf32>,
    } else {
    }
    %c0 = arith.constant 0 : index
    %c0_1 = arith.constant 0 : index
    %c0_2 = arith.constant 0 : index
    %3 = vector.load %arg2[%c0, %c0_1, %c0_2] : memref<1x16x16xf32, #tpu.memory_space<vmem>>, vector<1x16x16xf32>
    %4 = vector.shape_cast %3 : vector<1x16x16xf32> to vector<16x16xf32>
    %c0_3 = arith.constant 0 : index
    %c0_4 = arith.constant 0 : index
    %5 = vector.load %arg4[%c0_3, %c0_4] : memref<128x16xf32, #tpu.memory_space<vmem>>, vector<128x16xf32>
    %cst = arith.constant dense<0.000000e+00> : vector<16x128xf32>
    %6 = tpu.matmul %4, %5, %cst {dimension_numbers = #tpu.dot_dimension_numbers<[1], [1], [0], [0], [0, 0, 1, 0], [], []>} : vector<16x16xf32>, vector<128x16xf32>, vector<16x128xf32> -> vector<16x128xf32>
    %7 = vector.shape_cast %6 : vector<16x128xf32> to vector<1x16x128xf32>
    %c0_5 = arith.constant 0 : index
    %c0_6 = arith.constant 0 : index
    %c0_7 = arith.constant 0 : index
    %8 = vector.load %arg7[%c0_5, %c0_6, %c0_7] : memref<1x8x128xf32, #tpu.memory_space<vmem>>, vector<1x8x128xf32>
    %cst_8 = arith.constant dense<0.000000e+00> : vector<1x16x8xf32>
    %9 = tpu.matmul %7, %8, %cst_8 {dimension_numbers = #tpu.dot_dimension_numbers<[2], [2], [1], [1], [0, 0, 0, 1, 1, 1], [0], [0]>} : vector<1x16x128xf32>, vector<1x8x128xf32>, vector<1x16x8xf32> -> vector<1x16x8xf32>
    %10 = vector.shape_cast %9 : vector<1x16x8xf32> to vector<16x8xf32>
    %c0_9 = arith.constant 0 : index
    %c0_10 = arith.constant 0 : index
    %c0_11 = arith.constant 0 : index
    %11 = vector.load %arg6[%c0_9, %c0_10, %c0_11] : memref<1x16x8xf32, #tpu.memory_space<vmem>>, vector<1x16x8xf32>
    %12 = vector.shape_cast %11 : vector<1x16x8xf32> to vector<16x8xf32>
    %13 = vector.shape_cast %10 : vector<16x8xf32> to vector<1x16x8xf32>
    tpu.vector_store %arg6[%c0_9, %c0_10, %c0_11], %13 {strides = array<i32>} : memref<1x16x8xf32, #tpu.memory_space<vmem>>, vector<1x16x8xf32>,
    return
  }
  func.func @transform_0(%arg0: i32, %arg1: i32) -> (i32, i32, i32) {
    %c0_i32 = arith.constant 0 : i32
    %c0_i32_0 = arith.constant 0 : i32
    return %arg0, %arg1, %c0_i32 : i32, i32, i32
  }
  func.func @transform_1(%arg0: i32, %arg1: i32) -> (i32, i32, i32) {
    %c0_i32 = arith.constant 0 : i32
    %c0_i32_0 = arith.constant 0 : i32
    %c0_i32_1 = arith.constant 0 : i32
    return %arg0, %c0_i32, %c0_i32_0 : i32, i32, i32
  }
  func.func @transform_2(%arg0: i32, %arg1: i32) -> (i32, i32) {
    %c0_i32 = arith.constant 0 : i32
    %c0_i32_0 = arith.constant 0 : i32
    %c0_i32_1 = arith.constant 0 : i32
    return %c0_i32, %c0_i32_0 : i32, i32
  }
  func.func @transform_3(%arg0: i32, %arg1: i32) -> (i32, i32) {
    %c0_i32 = arith.constant 0 : i32
    %c0_i32_0 = arith.constant 0 : i32
    %c0_i32_1 = arith.constant 0 : i32
    return %c0_i32, %c0_i32_0 : i32, i32
  }
  func.func @transform_4(%arg0: i32, %arg1: i32) -> (i32, i32, i32) {
    %c0_i32 = arith.constant 0 : i32
    %c0_i32_0 = arith.constant 0 : i32
    return %arg0, %arg1, %c0_i32 : i32, i32, i32
  }
}

</mosaic_0001>

<bundles_post_ra>
// kernel: tpu_custom_call.1
= control target key start
LH: loop header
LB: loop body
LE: loop exit
PB: predicated region body
PF: predicated region fallthrough
CT: control target
= control target key end

     0   :  { %s963_s15 = smov 0   ;;  %s965_s16 = smov 0   ;;  %s1175_s0 = inlined_call_operand.vmem [shape: f32[2,16,16], index: 0, kind: input, shape index: {}]   ;;  %s1176_s1 = inlined_call_operand.vmem [shape: f32[2,8,16], index: 1, kind: input, shape index: {}]   ;;  %s1177_s2 = inlined_call_operand.vmem [shape: f32[128,16], index: 2, kind: input, shape index: {}]   ;;  %s1178_s3 = inlined_call_operand.vmem [shape: f32[128,16], index: 3, kind: input, shape index: {}]   ;;  %s1179_s4 = inlined_call_operand.vmem [shape: f32[2,16,8], index: 4, kind: output, shape index: {}]  }
   0x1   :  { %s967_s17 = smov 0  }
   0x2 LB: > { %s26_s18 = sadd.s32 1, %s930_s16  ;;  %p728_p0 = scmp.ge.s32.totalorder %s934_s17, 1  ;;  %s934_s17 = sphi %s967_s17, %s14_s17   ;;  %s930_s16 = sphi %s965_s16, %s1181_s16   ;;  %s926_s15 = sphi %s963_s15, %s1180_s15  }
   0x3   : > { %p28_p1 = scmp.ge.s32.totalorder %s26_s18, 2  ;;  %p192_p2 = scmp.lt.s32.totalorder %s934_s17, 3 }
   0x5   : > { %s1183_s18 = smov (%p28_p1, %s26_s18), 0  ;;  %p193_p3 = pnand %p728_p0, %p192_p2 }
   0x6   : > { %p231_p4 = scmp.lt.s32.totalorder (!%p193_p3), %s926_s15, 1 }
   0x7   : > { %196 = sbr.rel (%p193_p3) target bundleno = 470 (0x1d6), region = 36 }
   0xc   : > { %vm275_vm0 = vcmask 130048   ;;  %v415_v0 = vld [vmem:[%s1177_s2 + $0x78] sm:$0xff]  ;;  %v414_v2 = vld [vmem:[%s1177_s2 + $0x70] sm:$0xff]  ;;  %v936_v3 = vmov 0.0   ;;  %s1185_s15 = smov (!%p231_p4, %s926_s15), 1  ;;  %v413_v5 = vld [vmem:[%s1177_s2 + $0x68] sm:$0xff] }
   0xd   : > { %v274_v1 = vld [vmem:[%s1178_s3 + $0x78] sm:$0xff]  ;;  %811 = vmatprep.subr.mxu0 %v936_v3  ;;  %846 = vmatprep.subr.msk.mxu1 %vm275_vm0, %v415_v0  ;;  %v273_v4 = vld [vmem:[%s1178_s3 + $0x70] sm:$0xff]  ;;  %vm937_vm1 = vmmov 0   ;;  %s771_s29 = sshll.u32 %s1185_s15, 4  ;;  %v272_v6 = vld [vmem:[%s1178_s3 + $0x68] sm:$0xff]  ;;  %s731_s23 = sshll.u32 %s1185_s15, 3 }
   0xe   : > { %812 = vmatpush3.xpose.msk.msra.mxu0 %vm275_vm0, %v274_v1  ;;  %847 = vmatpush3.xpose.msk.msra.mxu1 %vm275_vm0, %v415_v0  ;;  %s1018_s8 = scalar_lea.vmem %s1175_s0, %s771_s29  ;;  %v412_v7 = vld [vmem:[%s1177_s2 + $0x60] sm:$0xff]  ;;  %v411_v10 = vld [vmem:[%s1177_s2 + $0x58] sm:$0xff]  ;;  %v410_v12 = vld [vmem:[%s1177_s2 + $0x50] sm:$0xff]  ;;  %s243_s28 = scalar_lea.vmem %s1176_s1, %s731_s23  ;;  %vm622_vm2 = vcmask 64512  }
   0xf   : > { %813 = vmatprep.subr.mxu0 %v936_v3  ;;  %848 = vmatprep.subr.msk.mxu1 %vm275_vm0, %v414_v2  ;;  %v398_v8 = vld [vmem:[%s1018_s8] sm:$0xff]  ;;  %v270_v11 = vld [vmem:[%s1178_s3 + $0x58] sm:$0xff]  ;;  %v269_v13 = vld [vmem:[%s1178_s3 + $0x50] sm:$0xff]  ;;  %s252_s6 = scalar_lea.vmem %s1179_s4, %s771_s29 }
  0x10   : > { %843 = vmatprep.mubr.msk.f32.mxu0 %vm937_vm1, %v936_v3  ;;  %v271_v9 = vld [vmem:[%s1178_s3 + $0x60] sm:$0xff]  ;;  %878 = vmatprep.mubr.msk.f32.mxu1 %vm275_vm0, %v398_v8  ;;  %v409_v14 = vld [vmem:[%s1177_s2 + $0x48] sm:$0xff]  ;;  %v407_v18 = vld [vmem:[%s1177_s2 + $0x38] sm:$0xff] }
  0x11   : > { %v268_v15 = vld [vmem:[%s1178_s3 + $0x48] sm:$0xff]  ;;  %v408_v16 = vld [vmem:[%s1177_s2 + $0x40] sm:$0xff]  ;;  %v266_v19 = vld [vmem:[%s1178_s3 + $0x38] sm:$0xff] }
  0x12   : > { %814 = vmatpush3.xpose.msk.msra.mxu0 %vm275_vm0, %v273_v4  ;;  %849 = vmatpush3.xpose.msk.msra.mxu1 %vm275_vm0, %v414_v2  ;;  %v267_v17 = vld [vmem:[%s1178_s3 + $0x40] sm:$0xff]  ;;  %v406_v20 = vld [vmem:[%s1177_s2 + $0x30] sm:$0xff]  ;;  %v405_v22 = vld [vmem:[%s1177_s2 + $0x28] sm:$0xff] }
  0x13   : > { %815 = vmatprep.subr.mxu0 %v936_v3  ;;  %850 = vmatprep.subr.msk.mxu1 %vm275_vm0, %v413_v5  ;;  %v265_v21 = vld [vmem:[%s1178_s3 + $0x30] sm:$0xff]  ;;  %v264_v23 = vld [vmem:[%s1178_s3 + $0x28] sm:$0xff]  ;;  %v404_v24 = vld [vmem:[%s1177_s2 + $0x20] sm:$0xff] }
  0x14   : > { %v263_v25 = vld [vmem:[%s1178_s3 + $0x20] sm:$0xff]  ;;  %v403_v26 = vld [vmem:[%s1177_s2 + $0x18] sm:$0xff]  ;;  %v402_v28 = vld [vmem:[%s1177_s2 + $0x10] sm:$0xff] }
  0x15   : > { %v262_v27 = vld [vmem:[%s1178_s3 + $0x18] sm:$0xff]  ;;  %v261_v29 = vld [vmem:[%s1178_s3 + $0x10] sm:$0xff]  ;;  %v401_v30 = vld [vmem:[%s1177_s2 + $0x8] sm:$0xff] }
  0x16   : > { %816 = vmatpush3.xpose.msk.msra.mxu0 %vm275_vm0, %v272_v6  ;;  %851 = vmatpush3.xpose.msk.msra.mxu1 %vm275_vm0, %v413_v5  ;;  %v260_v31 = vld [vmem:[%s1178_s3 + $0x8] sm:$0xff]  ;;  %v400_v32 = vld [vmem:[%s1177_s2] sm:$0xff] }
  0x17   : > { %817 = vmatprep.subr.mxu0 %v936_v3  ;;  %852 = vmatprep.subr.msk.mxu1 %vm275_vm0, %v412_v7  ;;  %v259_v33 = vld [vmem:[%s1178_s3] sm:$0xff]  ;;  %v399_v34 = vld [vmem:[%s1018_s8 + $0x8] sm:$0xff] }
  0x18   : > { %v258_v35 = vld [vmem:[%s243_s28] sm:$0xff] }
  0x1a   : > { %818 = vmatpush3.xpose.msk.msra.mxu0 %vm275_vm0, %v271_v9  ;;  %853 = vmatpush3.xpose.msk.msra.mxu1 %vm275_vm0, %v412_v7 }
  0x1b   : > { %819 = vmatprep.subr.mxu0 %v936_v3  ;;  %854 = vmatprep.subr.msk.mxu1 %vm275_vm0, %v411_v10 }
  0x1e   : > { %820 = vmatpush3.xpose.msk.msra.mxu0 %vm275_vm0, %v270_v11  ;;  %855 = vmatpush3.xpose.msk.msra.mxu1 %vm275_vm0, %v411_v10 }
  0x1f   : > { %821 = vmatprep.subr.mxu0 %v936_v3  ;;  %856 = vmatprep.subr.msk.mxu1 %vm275_vm0, %v410_v12 }
  0x22   : > { %822 = vmatpush3.xpose.msk.msra.mxu0 %vm275_vm0, %v269_v13  ;;  %857 = vmatpush3.xpose.msk.msra.mxu1 %vm275_vm0, %v410_v12 }
  0x23   : > { %823 = vmatprep.subr.mxu0 %v936_v3  ;;  %858 = vmatprep.subr.msk.mxu1 %vm275_vm0, %v409_v14 }
  0x26   : > { %824 = vmatpush3.xpose.msk.msra.mxu0 %vm275_vm0, %v268_v15  ;;  %859 = vmatpush3.xpose.msk.msra.mxu1 %vm275_vm0, %v409_v14 }
  0x27   : > { %825 = vmatprep.subr.mxu0 %v936_v3  ;;  %860 = vmatprep.subr.msk.mxu1 %vm275_vm0, %v408_v16 }
  0x2a   : > { %826 = vmatpush3.xpose.msk.msra.mxu0 %vm275_vm0, %v267_v17  ;;  %861 = vmatpush3.xpose.msk.msra.mxu1 %vm275_vm0, %v408_v16 }
  0x2b   : > { %827 = vmatprep.subr.mxu0 %v936_v3  ;;  %862 = vmatprep.subr.msk.mxu1 %vm275_vm0, %v407_v18 }
  0x2e   : > { %828 = vmatpush3.xpose.msk.msra.mxu0 %vm275_vm0, %v266_v19  ;;  %863 = vmatpush3.xpose.msk.msra.mxu1 %vm275_vm0, %v407_v18 }
  0x2f   : > { %829 = vmatprep.subr.mxu0 %v936_v3  ;;  %864 = vmatprep.subr.msk.mxu1 %vm275_vm0, %v406_v20 }
  0x32   : > { %830 = vmatpush3.xpose.msk.msra.mxu0 %vm275_vm0, %v265_v21  ;;  %865 = vmatpush3.xpose.msk.msra.mxu1 %vm275_vm0, %v406_v20 }
  0x33   : > { %831 = vmatprep.subr.mxu0 %v936_v3  ;;  %866 = vmatprep.subr.msk.mxu1 %vm275_vm0, %v405_v22 }
  0x36   : > { %832 = vmatpush3.xpose.msk.msra.mxu0 %vm275_vm0, %v264_v23  ;;  %867 = vmatpush3.xpose.msk.msra.mxu1 %vm275_vm0, %v405_v22 }
  0x37   : > { %833 = vmatprep.subr.mxu0 %v936_v3  ;;  %868 = vmatprep.subr.msk.mxu1 %vm275_vm0, %v404_v24 }
  0x3a   : > { %834 = vmatpush3.xpose.msk.msra.mxu0 %vm275_vm0, %v263_v25  ;;  %869 = vmatpush3.xpose.msk.msra.mxu1 %vm275_vm0, %v404_v24 }
  0x3b   : > { %835 = vmatprep.subr.mxu0 %v936_v3  ;;  %870 = vmatprep.subr.msk.mxu1 %vm275_vm0, %v403_v26 }
  0x3e   : > { %836 = vmatpush3.xpose.msk.msra.mxu0 %vm275_vm0, %v262_v27  ;;  %871 = vmatpush3.xpose.msk.msra.mxu1 %vm275_vm0, %v403_v26 }
  0x3f   : > { %837 = vmatprep.subr.mxu0 %v936_v3  ;;  %872 = vmatprep.subr.msk.mxu1 %vm275_vm0, %v402_v28 }
  0x42   : > { %838 = vmatpush3.xpose.msk.msra.mxu0 %vm275_vm0, %v261_v29  ;;  %873 = vmatpush3.xpose.msk.msra.mxu1 %vm275_vm0, %v402_v28 }
  0x43   : > { %839 = vmatprep.subr.mxu0 %v936_v3  ;;  %874 = vmatprep.subr.msk.mxu1 %vm275_vm0, %v401_v30 }
  0x46   : > { %840 = vmatpush3.xpose.msk.msra.mxu0 %vm275_vm0, %v260_v31  ;;  %875 = vmatpush3.xpose.msk.msra.mxu1 %vm275_vm0, %v401_v30 }
  0x47   : > { %841 = vmatprep.subr.mxu0 %v936_v3  ;;  %876 = vmatprep.subr.msk.mxu1 %vm275_vm0, %v400_v32 }
  0x4a   : > { %842 = vmatpush3.xpose.msk.msra.mxu0 %vm275_vm0, %v259_v33  ;;  %877 = vmatpush3.xpose.msk.msra.mxu1 %vm275_vm0, %v400_v32 }
  0x4d   : > { %844 = vmatmul.mubr.msk.f32.vlgmr.msra.gmra.mxu0 %vm275_vm0, %v258_v35  ;;  %879 = vmatmul.mubr.msk.f32.vlgmr.msra.gmra.mxu1 %vm275_vm0, %v399_v34 }
 0x10d   : > { %v393_v36 = vpop.f32.mrf.mxu0  ;;  %v880_v37 = vpop.f32.mrf.mxu1 }
 0x10e   : > { %881 = vmatprep.subr.mxu0 %v393_v36 }
 0x10f   : > { %v845_v38 = vpop.f32.mrf.mxu0  ;;  %v537_v39 = vpop.f32.mrf.mxu1  ;;  %882 = vmatpush3.xpose.msra.mxu0 %v393_v36 }
 0x110   : > { %883 = vmatprep.mubr.f32.mxu0 %v537_v39 }
 0x112   : > { %884 = vmatmul.mubr.f32.vlgmr.msra.gmra.mxu0 %v880_v37 }
 0x1d2   : > { %v885_v40 = vpop.f32.mrf.mxu0 }
 0x1d3   : > { %624 = vst.msk [vmem:[%s252_s6 + $0x8] sm:$0xff] %vm622_vm2, %v885_v40 }
 0x1d4   : > { %v613_v41 = vpop.f32.mrf.mxu0 }
 0x1d5   : > { %623 = vst.msk [vmem:[%s252_s6] sm:$0xff] %vm622_vm2, %v613_v41 }
 0x1d6 PF: > { %s14_s17 = sadd.s32 1, %s934_s17   ;;  %s1180_s15 = smov %s930_s16 }
 0x1d7   : > { %p11_p5 = scmp.ge.s32.totalorder %s14_s17, 4   ;;  %s1181_s16 = smov %s1183_s18 }
 0x1d9   :  { %13 = sbr.rel (!%p11_p5) target bundleno = 2 (0x2), region = 73 }

</bundles_post_ra>
